<compile_context>
chip_gen: v6e
topology: v6e:2x2x1
jax: 0.10.0
libtpu: 0.0.40
codegen_flags: <defaults>
</compile_context>

<pallas_src>
import math
from functools import partial

import jax
import jax.numpy as jnp
from jax.experimental import pallas as pl
from jax.experimental.pallas import tpu as pltpu

BN_EPS = 1e-5


def _round_up(a, b):
    return (a + b - 1) // b * b


def _linear_block_kernel(x_ref, w_ref, p_ref, o_ref, *, mm_dtype):
    # x_ref: (tm, K)   activations (native dtype; cast to matmul dtype here if needed)
    # w_ref: (K, tn)   pre-transposed Linear weight tile (matmul dtype)
    # p_ref: (3, tn)   f32: row 0 = bias, row 1 = BN scale, row 2 = BN shift
    # o_ref: (tm, tn)
    y = jnp.dot(x_ref[...].astype(mm_dtype), w_ref[...],
                preferred_element_type=jnp.float32)
    p = p_ref[...]
    y = y + p[0:1, :]                 # Linear bias
    y = jnp.maximum(y, 0.0)           # ReLU
    y = y * p[1:2, :] + p[2:3, :]     # folded eval-mode BatchNorm1d
    o_ref[...] = y.astype(o_ref.dtype)


def prepare_linear_block(weight, bias, gamma, beta, running_mean, running_var,
                         *, eps=BN_EPS, mm_dtype=jnp.bfloat16):
    """One-time (per model load) preparation of the constant operands.

    Returns (w_t, params):
      w_t:    (in_feats, N_pad)  transposed / cast / lane-padded Linear weight
      params: (3, N_pad)         packed f32 bias / BN scale / BN shift
    Hoisted out of the per-forward path so each forward pays zero weight-prep HBM traffic.
    """
    out_feats, _ = weight.shape
    n_pad = _round_up(out_feats, 128)
    scale = gamma / jnp.sqrt(running_var + eps)
    shift = beta - running_mean * scale
    w_t = weight.T.astype(mm_dtype)
    params = jnp.stack([bias, scale, shift], axis=0).astype(jnp.float32)
    if n_pad != out_feats:
        w_t = jnp.pad(w_t, ((0, 0), (0, n_pad - out_feats)))
        params = jnp.pad(params, ((0, 0), (0, n_pad - out_feats)))
    return w_t, params


def _choose_tiles(B, K, n_pad, x_isz, w_isz, out_isz, sub, budget):
    """Pick (tm, tn).

    tm: largest tile whose batch-padding waste is small (multiple of `sub`).
    tn: the full n_pad when the double-buffered footprint fits the VMEM budget
        (x then streams exactly once), else the largest 128-multiple divisor of
        n_pad (<= 1024) that fits.
    """
    tm = sub
    for c in (256, 128, 64, 32, 16, 8):
        if c % sub:
            continue
        if _round_up(B, c) - B <= max(2 * sub, B // 8):
            tm = c
            break
    tm = min(tm, _round_up(B, sub))

    def footprint(tm_, tn_):
        return (2 * tm_ * K * x_isz          # x tile (double-buffered)
                + 2 * K * tn_ * w_isz        # weight tile
                + 2 * 3 * tn_ * 4            # packed bias/scale/shift
                + 2 * tm_ * tn_ * out_isz)   # output tile

    n128 = n_pad // 128
    divisors = [d * 128 for d in range(n128, 0, -1) if n128 % d == 0]
    while True:
        tn = 128
        for c in divisors:
            if (c == n_pad or c <= 1024) and footprint(tm, c) <= budget:
                tn = c
                break
        if footprint(tm, tn) <= budget or tm <= sub:
            break
        tm = max(sub, tm // 2)
    return tm, tn


def massformer_linear_block_apply(x, w_t, params, out_feats, *, out_dtype=None,
                                  vmem_budget_bytes=24 * 1024 * 1024,
                                  x_buffer_count=None):
    """Fused Linear + ReLU + BatchNorm1d (eval) using pre-prepared (w_t, params).

    x:      (B, in_feats)
    w_t:    (in_feats, N_pad)  from prepare_linear_block
    params: (3, N_pad)         from prepare_linear_block
    """
    B, K = x.shape
    k_w, n_pad = w_t.shape
    assert k_w == K
    assert params.shape == (3, n_pad) and n_pad % 128 == 0 and out_feats <= n_pad
    out_dtype = x.dtype if out_dtype is None else out_dtype
    mm_dtype = w_t.dtype
    mm_isz = jnp.dtype(mm_dtype).itemsize
    out_isz = jnp.dtype(out_dtype).itemsize
    x_isz = jnp.dtype(x.dtype).itemsize
    sub = 16 if mm_isz < 4 else 8      # bf16 packs 2 rows per sublane

    tm, tn = _choose_tiles(B, K, n_pad, max(x_isz, mm_isz), mm_isz, out_isz,
                           sub, vmem_budget_bytes)
    n_steps = n_pad // tn
    m_steps = _round_up(B, tm) // tm

    # v7x has 2 TensorCores: make sure at least one "parallel" axis has extent >= 2.
    if n_steps == 1 and m_steps == 1:
        if tn >= 256 and (tn // 2) % 128 == 0:
            tn //= 2
        elif tm >= 2 * sub and (tm // 2) % sub == 0:
            tm //= 2
        n_steps = n_pad // tn
        m_steps = _round_up(B, tm) // tm
    B_pad = m_steps * tm

    # Only pre-cast x in HBM when it is re-streamed enough to amortize the extra copy;
    # otherwise cast on the VPU inside the kernel.
    precast = (x.dtype != mm_dtype) and n_steps >= 3
    x_p = x.astype(mm_dtype) if precast else x
    if B_pad != B:
        x_p = jnp.pad(x_p, ((0, B_pad - B), (0, 0)))
    x_tile_isz = jnp.dtype(x_p.dtype).itemsize

    footprint = (2 * tm * K * x_tile_isz + 2 * K * tn * mm_isz
                 + 2 * 3 * tn * 4 + 2 * tm * tn * out_isz)
    vmem_limit = int(min(56 * 1024 * 1024, max(2 * footprint, 16 * 1024 * 1024)))

    cost = pl.CostEstimate(
        flops=2 * B_pad * K * n_pad,
        transcendentals=0,
        bytes_accessed=(n_steps * B_pad * K * x_tile_isz   # x re-streamed per N tile
                        + K * n_pad * mm_isz               # weight read once
                        + 3 * n_pad * 4                    # packed bias/scale/shift
                        + B_pad * n_pad * out_isz))        # output

    if x_buffer_count is not None:
        x_spec_1d = pl.BlockSpec((tm, K), lambda i: (i, 0),
                                 pipeline_mode=pl.Buffered(x_buffer_count))
        x_spec_2d = pl.BlockSpec((tm, K), lambda j, i: (i, 0),
                                 pipeline_mode=pl.Buffered(x_buffer_count))
    else:
        x_spec_1d = pl.BlockSpec((tm, K), lambda i: (i, 0))
        x_spec_2d = pl.BlockSpec((tm, K), lambda j, i: (i, 0))

    if n_steps == 1:
        # Whole (padded) output width resident in VMEM: x streams through exactly once.
        grid = (m_steps,)
        in_specs = [x_spec_1d,
                    pl.BlockSpec((K, tn), lambda i: (0, 0)),
                    pl.BlockSpec((3, tn), lambda i: (0, 0))]
        out_specs = pl.BlockSpec((tm, tn), lambda i: (i, 0))
        dim_sem = ("parallel",)
    else:
        # N outer / M inner: the (K, tn) weight tile stays resident across the M loop.
        grid = (n_steps, m_steps)
        in_specs = [x_spec_2d,
                    pl.BlockSpec((K, tn), lambda j, i: (0, j)),
                    pl.BlockSpec((3, tn), lambda j, i: (0, j))]
        out_specs = pl.BlockSpec((tm, tn), lambda j, i: (i, j))
        dim_sem = ("parallel", "parallel")

    out = pl.pallas_call(
        partial(_linear_block_kernel, mm_dtype=mm_dtype),
        out_shape=jax.ShapeDtypeStruct((B_pad, n_pad), out_dtype),
        grid_spec=pltpu.PrefetchScalarGridSpec(
            num_scalar_prefetch=0,
            grid=grid,
            in_specs=in_specs,
            out_specs=out_specs),
        compiler_params=pltpu.CompilerParams(
            dimension_semantics=dim_sem,
            vmem_limit_bytes=vmem_limit),
        cost_estimate=cost,
    )(x_p, w_t, params)
    return out[:B, :out_feats]


def massformer_linear_block(x, weight, bias, gamma, beta, running_mean, running_var,
                            *, eps=BN_EPS, use_bf16_matmul=True, out_dtype=None,
                            vmem_budget_bytes=24 * 1024 * 1024):
    """One-shot helper (prep + apply).  Production code should call
    prepare_linear_block() once at model-load time and reuse (w_t, params)."""
    mm_dtype = jnp.bfloat16 if use_bf16_matmul else weight.dtype
    w_t, params = prepare_linear_block(weight, bias, gamma, beta, running_mean,
                                       running_var, eps=eps, mm_dtype=mm_dtype)
    return massformer_linear_block_apply(x, w_t, params, weight.shape[0],
                                         out_dtype=out_dtype,
                                         vmem_budget_bytes=vmem_budget_bytes)


def _reference(x, weight, bias, gamma, beta, running_mean, running_var, eps=BN_EPS):
    y = jnp.maximum(x @ weight.T + bias, 0.0)
    return gamma * (y - running_mean) / jnp.sqrt(running_var + eps) + beta


def _make_params(key, in_feats, out_feats):
    k_w, k_b, k_g, k_bt, k_rm, k_rv = jax.random.split(key, 6)
    bound = 1.0 / math.sqrt(in_feats)
    weight = jax.random.uniform(k_w, (out_feats, in_feats), jnp.float32, -bound, bound)
    bias = jax.random.uniform(k_b, (out_feats,), jnp.float32, -bound, bound)
    gamma = 1.0 + 0.1 * jax.random.normal(k_g, (out_feats,), jnp.float32)
    beta = 0.1 * jax.random.normal(k_bt, (out_feats,), jnp.float32)
    running_mean = 0.1 * jax.random.normal(k_rm, (out_feats,), jnp.float32)
    running_var = 1.0 + 0.1 * jax.random.uniform(k_rv, (out_feats,), jnp.float32)
    return weight, bias, gamma, beta, running_mean, running_var


if __name__ == "__main__":
    root = jax.random.PRNGKey(0)
    k_x1, k_x3a, k_x3b, k_p1, k_p3 = jax.random.split(root, 5)

    # Shapes intentionally ragged (B not a tile multiple, out_feats not a multiple
    # of 128) to exercise the padding / tiling / core-splitting paths.
    B1, in1, out1 = 50, 96, 200
    x1 = jax.random.normal(k_x1, (B1, in1), dtype=jnp.float32)
    p1 = _make_params(k_p1, in1, out1)
    ref1 = _reference(x1, *p1)

    # 1) f32 matmul path (2-D grid after the TensorCore-splittability adjustment).
    out_f32 = jax.block_until_ready(
        massformer_linear_block(x1, *p1, use_bf16_matmul=False))
    assert out_f32.shape == (B1, out1)
    assert jnp.allclose(out_f32, ref1, atol=1e-4, rtol=1e-4), "f32 mismatch vs reference"

    # 2) default path: bf16 MXU operands (x cast on the VPU inside the kernel since it
    #    is streamed < 3 times), f32 accumulation + f32 epilogue, f32 output.
    out_bf16 = jax.block_until_ready(massformer_linear_block(x1, *p1))
    assert out_bf16.shape == (B1, out1)
    assert jnp.allclose(out_bf16, ref1, atol=3e-2, rtol=3e-2), "bf16 mismatch vs reference"

    # 3) prep-once / apply-many path: constants prepared a single time and reused for two
    #    batches; whole-weight-resident 1-D grid with a multi-step M axis; bf16 output.
    B3, in3, out3 = 200, 96, 120
    p3 = _make_params(k_p3, in3, out3)
    w_t3, packed3 = prepare_linear_block(*p3, mm_dtype=jnp.bfloat16)
    for kx in (k_x3a, k_x3b):
        x3 = jax.random.normal(kx, (B3, in3), dtype=jnp.float32)
        ref3 = _reference(x3, *p3)
        o3 = jax.block_until_ready(
            massformer_linear_block_apply(x3, w_t3, packed3, out3,
                                          out_dtype=jnp.bfloat16))
        assert o3.shape == (B3, out3) and o3.dtype == jnp.bfloat16
        assert jnp.allclose(o3.astype(jnp.float32), ref3, atol=5e-2, rtol=5e-2), \
            "bf16-out mismatch vs reference"

    print("KERNEL_OK")
</pallas_src>

<mosaic_0001>
module attributes {stable_mosaic.version = 11 : i64} {
  func.func @_linear_block_kernel(%arg0: i32, %arg1: i32, %arg2: memref<56x96xf32, #tpu.memory_space<vmem>>, %arg3: memref<96x128xf32, #tpu.memory_space<vmem>>, %arg4: memref<3x128xf32, #tpu.memory_space<vmem>>, %arg5: memref<56x128xf32, #tpu.memory_space<vmem>>) attributes {dimension_semantics = [#tpu.dimension_semantics<parallel>, #tpu.dimension_semantics<parallel>], iteration_bounds = array<i64: 2, 1>, scalar_prefetch = 0 : i64, scratch_operands = 0 : i64, tpu.core_type = #tpu.core_type<tc>, window_params = [{transform_indices = @transform_0, window_bounds = array<i64: 56, 96>}, {transform_indices = @transform_1, window_bounds = array<i64: 96, 128>}, {transform_indices = @transform_2, window_bounds = array<i64: 3, 128>}, {transform_indices = @transform_3, window_bounds = array<i64: 56, 128>}]} {
    %c0 = arith.constant 0 : index
    %c0_0 = arith.constant 0 : index
    %0 = vector.load %arg2[%c0, %c0_0] : memref<56x96xf32, #tpu.memory_space<vmem>>, vector<56x96xf32>
    %c0_1 = arith.constant 0 : index
    %c0_2 = arith.constant 0 : index
    %1 = vector.load %arg3[%c0_1, %c0_2] : memref<96x128xf32, #tpu.memory_space<vmem>>, vector<96x128xf32>
    %cst = arith.constant dense<0.000000e+00> : vector<56x128xf32>
    %2 = tpu.matmul %0, %1, %cst {dimension_numbers = #tpu.dot_dimension_numbers<[1], [0], [0], [1], [0, 0, 1, 1], [], []>} : vector<56x96xf32>, vector<96x128xf32>, vector<56x128xf32> -> vector<56x128xf32>
    %c0_3 = arith.constant 0 : index
    %c0_4 = arith.constant 0 : index
    %3 = vector.load %arg4[%c0_3, %c0_4] : memref<3x128xf32, #tpu.memory_space<vmem>>, vector<3x128xf32>
    %4 = vector.extract_strided_slice %3 {offsets = [0, 0], sizes = [1, 128], strides = [1, 1]} : vector<3x128xf32> to vector<1x128xf32>
    %5 = vector.broadcast %4 : vector<1x128xf32> to vector<56x128xf32>
    %6 = arith.addf %2, %5 : vector<56x128xf32>
    %cst_5 = arith.constant 0.000000e+00 : f32
    %7 = vector.broadcast %cst_5 : f32 to vector<56x128xf32>
    %8 = arith.maximumf %6, %7 : vector<56x128xf32>
    %9 = vector.extract_strided_slice %3 {offsets = [1, 0], sizes = [1, 128], strides = [1, 1]} : vector<3x128xf32> to vector<1x128xf32>
    %10 = vector.broadcast %9 : vector<1x128xf32> to vector<56x128xf32>
    %11 = arith.mulf %8, %10 : vector<56x128xf32>
    %12 = vector.extract_strided_slice %3 {offsets = [2, 0], sizes = [1, 128], strides = [1, 1]} : vector<3x128xf32> to vector<1x128xf32>
    %13 = vector.broadcast %12 : vector<1x128xf32> to vector<56x128xf32>
    %14 = arith.addf %11, %13 : vector<56x128xf32>
    %c0_6 = arith.constant 0 : index
    %c0_7 = arith.constant 0 : index
    %15 = vector.load %arg5[%c0_6, %c0_7] : memref<56x128xf32, #tpu.memory_space<vmem>>, vector<56x128xf32>
    tpu.vector_store %arg5[%c0_6, %c0_7], %14 {strides = array<i32>} : memref<56x128xf32, #tpu.memory_space<vmem>>, vector<56x128xf32>,
    return
  }
  func.func @transform_0(%arg0: i32, %arg1: i32) -> (i32, i32) {
    %c0_i32 = arith.constant 0 : i32
    %c0_i32_0 = arith.constant 0 : i32
    return %arg1, %c0_i32 : i32, i32
  }
  func.func @transform_1(%arg0: i32, %arg1: i32) -> (i32, i32) {
    %c0_i32 = arith.constant 0 : i32
    %c0_i32_0 = arith.constant 0 : i32
    return %c0_i32, %arg0 : i32, i32
  }
  func.func @transform_2(%arg0: i32, %arg1: i32) -> (i32, i32) {
    %c0_i32 = arith.constant 0 : i32
    %c0_i32_0 = arith.constant 0 : i32
    return %c0_i32, %arg0 : i32, i32
  }
  func.func @transform_3(%arg0: i32, %arg1: i32) -> (i32, i32) {
    %c0_i32 = arith.constant 0 : i32
    return %arg1, %arg0 : i32, i32
  }
}

</mosaic_0001>

<bundles_post_ra>
// kernel: tpu_custom_call.1
= control target key start
LH: loop header
LB: loop body
LE: loop exit
PB: predicated region body
PF: predicated region fallthrough
CT: control target
= control target key end

     0   :  { %s1253_s0 = inlined_call_operand.hbm [shape: f32[56,96], index: 0, kind: input, shape index: {}]   ;;  %s1254_s1 = inlined_call_operand.hbm [shape: f32[96,256], index: 1, kind: input, shape index: {}]   ;;  %s1255_s2 = inlined_call_operand.hbm [shape: f32[3,256], index: 2, kind: input, shape index: {}]   ;;  %s1256_s3 = inlined_call_operand.hbm [shape: f32[56,256], index: 3, kind: output, shape index: {}]  }
   0x1   :  { %1262 = sst [smem:[#allocation12_spill]] %s1254_s1 }
   0x2   :  { %8 = vsyncpa [#allocation3], 0 }
   0x3   :  { %9 = vsyncpa [#allocation6], 0 }
   0x4   :  { %11 = vsyncpa [#allocation6 + $0x1], 0 }
   0x5   :  { %12 = vsyncpa [#allocation4], 0 }
   0x6   :  { %14 = vsyncpa [#allocation4 + $0x1], 0  ;;  %s974_s12 = smov 0   ;;  %s976_s13 = smov 0  }
   0x7   :  { %s978_s14 = smov 0   ;;  %s980_s15 = smov 0  }
   0x8   :  { %s982_s16 = smov 0   ;;  %s984_s17 = smov 0  }
   0x9 LB: > { %s32_s18 = sadd.s32 1, %s936_s16  ;;  %s65_s19 = sadd.s32 1, %s928_s14  ;;  %s940_s17 = sphi %s984_s17, %s20_s17   ;;  %s936_s16 = sphi %s982_s16, %s1282_s16   ;;  %s932_s15 = sphi %s980_s15, %s1281_s15   ;;  %s928_s14 = sphi %s978_s14, %s1280_s14   ;;  %s924_s13 = sphi %s976_s13, %s1279_s13   ;;  %s920_s12 = sphi %s974_s12, %s1278_s12  }
   0xa   : > { %p34_p0 = scmp.ge.s32.totalorder %s32_s18, 2  ;;  %p72_p1 = scmp.ne.s32.totalorder %s928_s14, %s924_s13 }
   0xb   : > { %p73_p2 = scmp.eq.s32.totalorder %s940_s17, 0  ;;  %p714_p6 = scmp.lt.s32.totalorder %s940_s17, 2 }
   0xc   : > { %s1284_s18 = smov (%p34_p0, %s32_s18), 0  ;;  %s172_s21 = sand.u32 1, %s940_s17  }
   0xd   : > { %p74_p3 = por %p73_p2, %p72_p1  ;;  %s62_s20 = ssub.s32 %s936_s16, %s1284_s18 }
   0xe   : > { %p63_p5 = scmp.eq.s32.totalorder %s62_s20, 0  ;;  %s174_s22 = sand.u32 1, %s928_s14  }
   0xf   : > { %s685_s24 = smul.u32 96, %s174_s22  ;;  %s581_s25 = sshll.u32 %s936_s16, 7 }
  0x10   : > { %s1021_s23 = scalar_select %p63_p5, %s928_s14, %s65_s19  }
  0x11   : > { %p1026_p7 = pnand %p714_p6, %p74_p3  ;;  %s1264_s1 = sld [smem:[#allocation12_spill]] }
  0x12   : > { %s176_s30 = scalar_lea.vmem [#allocation5], %s685_s24  ;;  %s1033_s5 = scalar_lea.sflag [#allocation6], %s172_s21 }
  0x13   : > { %s182_s4 = sshll.u32 %s176_s30, 4  ;;  %p776_p8 = pneg %p1026_p7  ;;  %s183_s4 = int_to_ptr.vmem [resolvable:$true] %s182_s4 }
  0x14   : > { %s787_s6 = scalar_lea.vmem %s183_s4, 1536  ;;  %s942_s7 = smov [#allocation5]  }
  0x15   : > { %p788_p9 = scmp.ne.s32.totalorder %s183_s4, %s787_s6  ;;  %s792_s8 = sshll.u32 %s942_s7, 4  ;;  %s793_s8 = int_to_ptr.vmem [resolvable:$false] %s792_s8 }
  0x16   : > { %s794_s9 = scalar_lea.vmem %s793_s8, 3072  ;;  %p795_p12 = scmp.lt.s32.totalorder %s183_s4, %s793_s8 }
  0x17   : > { %s181_s29 = scalar_lea.hbm %s1264_s1, %s581_s25  ;;  %p790_p10 = pnand %p788_p9, %p776_p8 }
  0x18   : > { %p796_p13 = scmp.lt.s32.totalorder %s794_s9, %s787_s6 }
  0x19   : > { %p791_p11 = pneg %p790_p10 }
  0x1a   : > { %p797_p0 = por %p796_p13, %p795_p12 }
  0x1c   : > { %p798_p2 = pnand %p797_p0, %p791_p11 }
  0x1e   : > { %801 = shalt.err (!%p798_p2)
}
  0x1f   : > { %s943_s10 = smov 256   ;;  %s1257_s11 = smov 128  }
  0x20   : > { %s1258_s19 = smov 8   ;;  %s1046_s20 = sadd.s32 4294967295, %s940_s17  }
  0x21   : > { %705 = dma.hbm_to_vmem [thread:$0]  (!%p1026_p7), %s181_s29, 1536, %s183_s4, %s1033_s5, %s943_s10, %s1257_s11, %s1258_s19  }
  0x22   : > { %s577_s21 = sadd.s32 4294967294, %s940_s17   ;;  %p78_p3 = scmp.ne.s32.totalorder %s924_s13, %s920_s12 }
  0x23   : > { %p1260_p5 = scmp.eq.s32.totalorder %s1046_s20, 0  ;;  %p130_p6 = scmp.eq.s32.totalorder %s1046_s20, 1 }
  0x24   : > { %p136_p9 = scmp.eq.s32.totalorder %s577_s21, 1  ;;  %p578_p11 = scmp.ge.s32.totalorder %s940_s17, 1 }
  0x25   : > { %p1055_p10 = por %p1260_p5, %p78_p3  ;;  %p1063_p12 = por %p130_p6, %p72_p1 }
  0x26   : > { %p1067_p13 = por %p136_p9, %p78_p3  ;;  %p143_p0 = scmp.lt.s32.totalorder %s940_s17, 3 }
  0x27   : > { %s1265_s24 = scalar_select %p1055_p10, 1, 0 }
  0x28   : > { %s1266_s25 = scalar_select %p1063_p12, 1, 0 }
  0x29   : > { %s1267_s27 = scalar_select %p1067_p13, 1, 0 }
  0x2a   : > { %s582_s28 = sshll.u32 %s174_s22, 2  ;;  %p1074_p2 = pnand %p578_p11, %p143_p0 }
  0x2b   : > { %s946_s30 = smov [#allocation2]   ;;  %s583_s6 = sshll.u32 %s936_s16, 6 }
  0x2c   : > { %s158_s4 = sshll.u32 %s946_s30, 4  ;;  %p698_p1 = pneg %p1074_p2  ;;  %s1078_s4 = int_to_ptr.vmem [resolvable:$true] %s158_s4 }
  0x2d   : > { %s201_s9 = scalar_lea.hbm %s1255_s2, %s583_s6  ;;  %s196_s10 = scalar_lea.vmem [#allocation7], %s582_s28 }
  0x2e   : > { %s203_s21 = sshll.u32 %s196_s10, 4  ;;  %p1088_p3 = pnand %p698_p1, %p1260_p5  ;;  %s204_s21 = int_to_ptr.vmem [resolvable:$true] %s203_s21 }
  0x2f   : > { %s815_s11 = scalar_lea.vmem %s204_s21, 64  ;;  %s947_s30 = smov [#allocation7]  }
  0x30   : > { %p816_p6 = scmp.ne.s32.totalorder %s204_s21, %s815_s11  ;;  %s820_s19 = sshll.u32 %s947_s30, 4  ;;  %s821_s19 = int_to_ptr.vmem [resolvable:$false] %s820_s19 }
  0x31   : > { %s822_s1 = scalar_lea.vmem %s821_s19, 128  ;;  %p823_p0 = scmp.lt.s32.totalorder %s204_s21, %s821_s19 }
  0x32   : > { %p818_p9 = pnand %p816_p6, %p776_p8  ;;  %p824_p4 = scmp.lt.s32.totalorder %s822_s1, %s815_s11 }
  0x34   : > { %p819_p11 = pneg %p818_p9  ;;  %p825_p13 = por %p824_p4, %p823_p0 }
  0x36   : > { %p826_p12 = pnand %p825_p13, %p819_p11 }
  0x38   : > { %829 = shalt.err (!%p826_p12)
}
  0x39   : > { %708 = dma.hbm_to_vmem [thread:$0]  (!%p1026_p7), %s201_s9, 64, %s204_s21, %s1033_s5  }
  0x3a   : > { %p832_p8 = pneg %p1088_p3  ;;  %s841_s28 = scalar_lea.vmem %s1078_s4, 896 }
  0x3b   : > { %p842_p1 = scmp.ne.s32.totalorder %s1078_s4, %s841_s28  ;;  %p849_p5 = scmp.lt.s32.totalorder %s1078_s4, %s1078_s4 }
  0x3c   : > { %p850_p10 = scmp.lt.s32.totalorder %s841_s28, %s841_s28 }
  0x3d   : > { %p844_p6 = pnand %p842_p1, %p832_p8 }
  0x3e   : > { %p851_p4 = por %p850_p10, %p849_p5 }
  0x3f   : > { %p845_p9 = pneg %p844_p6 }
  0x41   : > { %p852_p13 = pnand %p851_p4, %p845_p9 }
  0x43   : > { %855 = shalt.err (!%p852_p13)
}
  0x44   : > { %s1270_s1 = smov 8   ;;  %s1271_s26 = smov 128  }
  0x45   : > { %701 = dma.hbm_to_vmem [thread:$0]  (!%p1088_p3), %s1253_s0, 896, %s1078_s4, [#allocation3], %s1271_s26, %s1271_s26, %s1270_s1  }
  0x46   : > { %212 = sbr.rel (%p1074_p2) target bundleno = 335 (0x14f), region = 32  ;;  %p1272_p7 = scmp.eq.s32.totalorder (!%p1074_p2), %s1046_s20, 0 }
  0x4b   : > { %907 = dma.done.wait (%p1272_p7), [#allocation3], 896   ;;  %p1273_p5 = pmov %p1272_p7 }
  0x4c   : > { %s218_s19 = sand.u32 1, %s1046_s20   ;;  %s1121_s6 = sand.u32 1, %s924_s13  }
  0x4d   : > { %909 = vsyncadd (%p1273_p5), [#allocation3], 4294966400  ;;  %s686_s7 = smul.u32 96, %s1121_s6  ;;  %s219_s8 = scalar_lea.sflag [#allocation6], %s218_s19 }
  0x4e   : > { %p1274_p10 = scmp.ne.s32.totalorder %s1265_s24, 0 }
  0x4f   : > { %s1124_s9 = scalar_lea.vmem [#allocation5], %s686_s7 }
  0x50   : > { %911 = dma.done.wait (%p1274_p10), %s219_s8, 1600  }
  0x51   : > { %913 = vsyncadd (%p1274_p10), %s219_s8, 4294965696  ;;  %v948_v0 = vmov 0.0   ;;  %vm949_vm0 = vmmov 0   ;;  %v279_v1 = vld [vmem:[%s1124_s9 + $0x58] sm:$0xff]  ;;  %v278_v2 = vld [vmem:[%s1124_s9 + $0x50] sm:$0xff]  ;;  %vm285_vm1 = vcmask 785408   ;;  %v281_v20 = vlaneseq }
  0x52   : > { %616 = vmatprep.subr.mxu0 %v948_v0  ;;  %661 = vmatprep.subr.mxu1 %v948_v0  ;;  %v277_v3 = vld [vmem:[%s1124_s9 + $0x48] sm:$0xff]  ;;  %v276_v4 = vld [vmem:[%s1124_s9 + $0x40] sm:$0xff]  ;;  %v275_v5 = vld [vmem:[%s1124_s9 + $0x38] sm:$0xff]  ;;  %s586_s20 = sshll.u32 %s1121_s6, 2  ;;  %s687_s29 = smul.u32 56, %s1121_s6 }
  0x53   : > { %640 = vmatprep.mubr.msk.f32.mxu0 %vm949_vm0, %v948_v0  ;;  %652 = vmatprep.mubr.msk.f32.mxu1 %vm949_vm0, %v948_v0  ;;  %v274_v6 = vld [vmem:[%s1124_s9 + $0x30] sm:$0xff]  ;;  %v273_v7 = vld [vmem:[%s1124_s9 + $0x28] sm:$0xff]  ;;  %v272_v8 = vld [vmem:[%s1124_s9 + $0x20] sm:$0xff]  ;;  %v282_v21 = vshrl.u32 %v281_v20, 7  ;;  %s231_s24 = scalar_lea.vmem [#allocation7], %s586_s20  ;;  %s594_s21 = sshll.u32 %s932_s15, 7 }
  0x54   : > { %617 = vmatpush3.msra.mxu0 %v279_v1  ;;  %673 = vmatpush3.msra.mxu1 %v279_v1  ;;  %v271_v9 = vld [vmem:[%s1124_s9 + $0x18] sm:$0xff]  ;;  %v270_v10 = vld [vmem:[%s1124_s9 + $0x10] sm:$0xff]  ;;  %v269_v11 = vld [vmem:[%s1124_s9 + $0x8] sm:$0xff]  ;;  %s1189_s4 = scalar_lea.vmem [#allocation8], %s687_s29  ;;  %s1204_s28 = scalar_lea.hbm %s1256_s3, %s594_s21 }
  0x55   : > { %618 = vmatprep.subr.mxu0 %v948_v0  ;;  %662 = vmatprep.subr.mxu1 %v948_v0  ;;  %v268_v12 = vld [vmem:[%s1124_s9] sm:$0xff]  ;;  %v261_v13 = vld [vmem:[#allocation2] sm:$0xff]  ;;  %v262_v15 = vld [vmem:[#allocation2 + $0x8] sm:$0xff]  ;;  %v283_v22 = vsub.s32 0, %v282_v21  ;;  %v416_v25 = vsub.s32 1, %v282_v21  ;;  %v427_v26 = vsub.s32 2, %v282_v21 }
  0x56   : > { %619 = vmatpush3.msra.mxu0 %v278_v2  ;;  %674 = vmatpush3.msra.mxu1 %v278_v2  ;;  %v265_v14 = vld [vmem:[#allocation2 + $0x20] sm:$0xff]  ;;  %v266_v16 = vld [vmem:[#allocation2 + $0x28] sm:$0xff]  ;;  %v263_v17 = vld [vmem:[#allocation2 + $0x10] sm:$0xff]  ;;  %s459_s10 = sshll.u32 %s1189_s4, 4  ;;  %s444_s1 = scalar_lea.sflag [#allocation4], %s1121_s6  ;;  %s1197_s10 = int_to_ptr.vmem [resolvable:$true] %s459_s10 }
  0x57   : > { %620 = vmatprep.subr.mxu0 %v948_v0  ;;  %663 = vmatprep.subr.mxu1 %v948_v0  ;;  %v267_v18 = vld [vmem:[#allocation2 + $0x30] sm:$0xff]  ;;  %v264_v19 = vld [vmem:[#allocation2 + $0x18] sm:$0xff]  ;;  %s856_s26 = scalar_lea.vmem %s1197_s10, 896  ;;  %p1275_p2 = scmp.ne.s32.totalorder %s1266_s25, 0 }
  0x58   : > { %621 = vmatpush3.msra.mxu0 %v277_v3  ;;  %675 = vmatpush3.msra.mxu1 %v277_v3  ;;  %v280_v23 = vld [vmem:[%s231_s24] sm:$0x7]  ;;  %p857_p12 = scmp.ne.s32.totalorder %s1197_s10, %s856_s26  ;;  %s950_s15 = smov [#allocation8]  }
  0x59   : > { %622 = vmatprep.subr.mxu0 %v948_v0  ;;  %664 = vmatprep.subr.mxu1 %v948_v0  ;;  %v284_v24 = vrot.slane %v280_v23, %v283_v22  ;;  %v417_v30 = vrot.slane %v280_v23, %v416_v25  ;;  %v428_v35 = vrot.slane %v280_v23, %v427_v26  ;;  %s860_s11 = sshll.u32 %s950_s15, 4  ;;  %s861_s11 = int_to_ptr.vmem [resolvable:$false] %s860_s11 }
  0x5a   : > { %623 = vmatpush3.msra.mxu0 %v276_v4  ;;  %676 = vmatpush3.msra.mxu1 %v276_v4  ;;  %p858_p3 = pnand %p857_p12, %p1275_p2  ;;  %s862_s5 = scalar_lea.vmem %s861_s11, 1792 }
  0x5b   : > { %624 = vmatprep.subr.mxu0 %v948_v0  ;;  %665 = vmatprep.subr.mxu1 %v948_v0  ;;  %p863_p0 = scmp.lt.s32.totalorder %s1197_s10, %s861_s11  ;;  %p864_p8 = scmp.lt.s32.totalorder %s862_s5, %s856_s26 }
  0x5c   : > { %625 = vmatpush3.msra.mxu0 %v275_v5  ;;  %677 = vmatpush3.msra.mxu1 %v275_v5  ;;  %p859_p11 = pneg %p858_p3 }
  0x5d   : > { %626 = vmatprep.subr.mxu0 %v948_v0  ;;  %666 = vmatprep.subr.mxu1 %v948_v0  ;;  %p865_p1 = por %p864_p8, %p863_p0 }
  0x5e   : > { %627 = vmatpush3.msra.mxu0 %v274_v6  ;;  %678 = vmatpush3.msra.mxu1 %v274_v6 }
  0x5f   : > { %628 = vmatprep.subr.mxu0 %v948_v0  ;;  %667 = vmatprep.subr.mxu1 %v948_v0  ;;  %p866_p6 = pnand %p865_p1, %p859_p11 }
  0x60   : > { %629 = vmatpush3.msra.mxu0 %v273_v7  ;;  %679 = vmatpush3.msra.mxu1 %v273_v7 }
  0x61   : > { %630 = vmatprep.subr.mxu0 %v948_v0  ;;  %668 = vmatprep.subr.mxu1 %v948_v0 }
  0x62   : > { %631 = vmatpush3.msra.mxu0 %v272_v8  ;;  %680 = vmatpush3.msra.mxu1 %v272_v8 }
  0x63   : > { %632 = vmatprep.subr.mxu0 %v948_v0  ;;  %669 = vmatprep.subr.mxu1 %v948_v0 }
  0x64   : > { %633 = vmatpush3.msra.mxu0 %v271_v9  ;;  %681 = vmatpush3.msra.mxu1 %v271_v9 }
  0x65   : > { %634 = vmatprep.subr.mxu0 %v948_v0  ;;  %670 = vmatprep.subr.mxu1 %v948_v0 }
  0x66   : > { %635 = vmatpush3.msra.mxu0 %v270_v10  ;;  %682 = vmatpush3.msra.mxu1 %v270_v10 }
  0x67   : > { %636 = vmatprep.subr.mxu0 %v948_v0  ;;  %671 = vmatprep.subr.mxu1 %v948_v0 }
  0x68   : > { %637 = vmatpush3.msra.mxu0 %v269_v11  ;;  %683 = vmatpush3.msra.mxu1 %v269_v11 }
  0x69   : > { %638 = vmatprep.subr.mxu0 %v948_v0  ;;  %672 = vmatprep.subr.mxu1 %v948_v0 }
  0x6a   : > { %639 = vmatpush3.msra.mxu0 %v268_v12  ;;  %684 = vmatpush3.msra.mxu1 %v268_v12 }
  0x6b   : > { %641 = vmatmul.mubr.msk.f32.vlgmr.msra.gmra.mxu0 %vm285_vm1, %v261_v13  ;;  %653 = vmatmul.mubr.msk.f32.vlgmr.msra.gmra.mxu1 %vm285_vm1, %v265_v14 }
  0x6c   : > { %643 = vmatprep.mubr.msk.f32.mxu0 %vm949_vm0, %v948_v0  ;;  %655 = vmatprep.mubr.msk.f32.mxu1 %vm949_vm0, %v948_v0 }
  0x6f   : > { %644 = vmatmul.mubr.msk.f32.gmra.mxu0 %vm285_vm1, %v262_v15  ;;  %656 = vmatmul.mubr.msk.f32.gmra.mxu1 %vm285_vm1, %v266_v16 }
  0x70   : > { %646 = vmatprep.mubr.msk.f32.mxu0 %vm949_vm0, %v948_v0  ;;  %658 = vmatprep.mubr.msk.f32.mxu1 %vm949_vm0, %v948_v0 }
  0x73   : > { %647 = vmatmul.mubr.msk.f32.gmra.mxu0 %vm285_vm1, %v263_v17  ;;  %659 = vmatmul.mubr.msk.f32.gmra.mxu1 %vm285_vm1, %v267_v18 }
  0x74   : > { %649 = vmatprep.mubr.msk.f32.mxu0 %vm949_vm0, %v948_v0 }
  0x77   : > { %650 = vmatmul.mubr.msk.f32.gmra.mxu0 %vm285_vm1, %v264_v19 }
 0x12b   : > { %v373_v27 = vpop.f32.mrf.mxu0  ;;  %v393_v28 = vpop.f32.mrf.mxu1 }
 0x12c   : > { %v374_v29 = vadd.f32 %v373_v27, %v284_v24  ;;  %v394_v31 = vadd.f32 %v393_v28, %v284_v24 }
 0x12d   : > { %v642_v32 = vpop.f32.mrf.mxu0  ;;  %v654_v33 = vpop.f32.mrf.mxu1 }
 0x12e   : > { %v407_v34 = vmax.f32 %v374_v29, 0.0  ;;  %v411_v36 = vmax.f32 %v394_v31, 0.0 }
 0x12f   : > { %v378_v37 = vpop.f32.mrf.mxu0  ;;  %v398_v38 = vpop.f32.mrf.mxu1 }
 0x130   : > { %v418_v39 = vmul.f32 %v417_v30, %v407_v34  ;;  %v422_v40 = vmul.f32 %v417_v30, %v411_v36  ;;  %v379_v41 = vadd.f32 %v378_v37, %v284_v24  ;;  %v399_v42 = vadd.f32 %v398_v38, %v284_v24 }
 0x131   : > { %v645_v43 = vpop.f32.mrf.mxu0  ;;  %v657_v44 = vpop.f32.mrf.mxu1 }
 0x132   : > { %v429_v45 = vadd.f32 %v428_v35, %v418_v39  ;;  %v433_v46 = vadd.f32 %v428_v35, %v422_v40  ;;  %v408_v47 = vmax.f32 %v379_v41, 0.0  ;;  %v412_v48 = vmax.f32 %v399_v42, 0.0 }
 0x133   : > { %v383_v49 = vpop.f32.mrf.mxu0  ;;  %v403_v50 = vpop.f32.mrf.mxu1 }
 0x134   : > { %436 = vst [vmem:[%s1189_s4] sm:$0xff] %v429_v45  ;;  %440 = vst [vmem:[%s1189_s4 + $0x20] sm:$0xff] %v433_v46  ;;  %v419_v51 = vmul.f32 %v417_v30, %v408_v47  ;;  %v423_v52 = vmul.f32 %v417_v30, %v412_v48  ;;  %v384_v53 = vadd.f32 %v383_v49, %v284_v24 }
 0x135   : > { %v404_v54 = vadd.f32 %v403_v50, %v284_v24  ;;  %v648_v55 = vpop.f32.mrf.mxu0  ;;  %v660_v56 = vpop.f32.mrf.mxu1 }
 0x136   : > { %v430_v57 = vadd.f32 %v428_v35, %v419_v51  ;;  %v434_v58 = vadd.f32 %v428_v35, %v423_v52  ;;  %v409_v59 = vmax.f32 %v384_v53, 0.0 }
 0x137   : > { %v413_v60 = vmax.f32 %v404_v54, 0.0  ;;  %v388_v61 = vpop.f32.mrf.mxu0 }
 0x138   : > { %437 = vst [vmem:[%s1189_s4 + $0x8] sm:$0xff] %v430_v57  ;;  %441 = vst [vmem:[%s1189_s4 + $0x28] sm:$0xff] %v434_v58  ;;  %v420_v62 = vmul.f32 %v417_v30, %v409_v59  ;;  %v389_v0 = vadd.f32 %v388_v61, %v284_v24 }
 0x139   : > { %v424_v63 = vmul.f32 %v417_v30, %v413_v60  ;;  %v651_v1 = vpop.f32.mrf.mxu0 }
 0x13a   : > { %v431_v2 = vadd.f32 %v428_v35, %v420_v62  ;;  %v410_v4 = vmax.f32 %v389_v0, 0.0 }
 0x13b   : > { %v435_v3 = vadd.f32 %v428_v35, %v424_v63 }
 0x13c   : > { %438 = vst [vmem:[%s1189_s4 + $0x10] sm:$0xff] %v431_v2  ;;  %v421_v5 = vmul.f32 %v417_v30, %v410_v4 }
 0x13d   : > { %442 = vst [vmem:[%s1189_s4 + $0x30] sm:$0xff] %v435_v3 }
 0x13e   : > { %v432_v6 = vadd.f32 %v428_v35, %v421_v5 }
 0x140   : > { %439 = vst [vmem:[%s1189_s4 + $0x18] sm:$0xff] %v432_v6 }
 0x141   : > { %869 = shalt.err (!%p866_p6)
}
 0x142   : > { %s870_s19 = scalar_lea.hbm %s1204_s28, 896  ;;  %s874_s9 = scalar_lea.hbm %s1256_s3, 1792 }
 0x143   : > { %p871_p9 = scmp.ne.s32.totalorder %s1204_s28, %s870_s19  ;;  %p875_p7 = scmp.lt.s32.totalorder %s1204_s28, %s1256_s3 }
 0x144   : > { %p876_p5 = scmp.lt.s32.totalorder %s874_s9, %s870_s19 }
 0x145   : > { %p872_p4 = pnand %p871_p9, %p1275_p2 }
 0x146   : > { %p877_p10 = por %p876_p5, %p875_p7 }
 0x147   : > { %p873_p13 = pneg %p872_p4 }
 0x149   : > { %p878_p12 = pnand %p877_p10, %p873_p13 }
 0x14b   : > { %881 = shalt.err (!%p878_p12)
}
 0x14c   : > { %s951_s29 = smov 128   ;;  %s952_s4 = smov 256  }
 0x14d   : > { %s953_s21 = smov 8  }
 0x14e   : > { %696 = dma.vmem_to_hbm [thread:$0]  (%p1275_p2), %s1197_s10, 896, %s1204_s28, %s444_s1, %s951_s29, %s952_s4, %s953_s21  }
 0x14f PF: > { %s474_s22 = sand.u32 1, %s920_s12   ;;  %p1276_p3 = scmp.ne.s32.totalorder %s1267_s27, 0 }
 0x150   : > { %p1277_p11 = scmp.ge.s32.totalorder %s940_s17, 2  ;;  %s475_s30 = scalar_lea.sflag [#allocation4], %s474_s22 }
 0x152   : > { %p710_p0 = pnand %p1277_p11, %p1276_p3 }
 0x154   : > { %p711_p8 = pneg %p710_p0 }
 0x156   : > { %915 = dma.done.wait (%p711_p8), %s475_s30, 896  }
 0x157   : > { %917 = vsyncadd (%p711_p8), %s475_s30, 4294966400  ;;  %s20_s17 = sadd.s32 1, %s940_s17   ;;  %s1278_s12 = smov %s924_s13 }
 0x158   : > { %p17_p1 = scmp.ge.s32.totalorder %s20_s17, 4   ;;  %s1279_s13 = smov %s928_s14 }
 0x159   : > { %s1280_s14 = smov %s1021_s23  ;;  %s1281_s15 = smov %s936_s16 }
 0x15a   : > { %s1282_s16 = smov %s1284_s18  ;;  %19 = sbr.rel (!%p17_p1) target bundleno = 9 (0x9), region = 94 }
 0x15f   :  { %480 = vsyncpa [#allocation3], 1 }
 0x160   :  { %482 = vsyncpa [#allocation3 + $0x1], 1 }
 0x161   :  { %483 = vsyncpa [#allocation6], 1 }
 0x162   :  { %485 = vsyncpa [#allocation6 + $0x1], 1 }
 0x163   :  { %486 = vsyncpa [#allocation4], 1 }
 0x164   :  { %488 = vsyncpa [#allocation4 + $0x1], 1 }

</bundles_post_ra>
